<compile_context>
chip_gen: v7x
topology: tpu7x:2x2x1
jax: 0.10.0
libtpu: 0.0.40
codegen_flags: <defaults>
</compile_context>

<pallas_src>
import functools

import jax
import jax.numpy as jnp
from jax.experimental import pallas as pl
from jax.experimental.pallas import tpu as pltpu

GROUPS = 32          # GroupNorm(2**5, ...)
EPS = 1e-5           # torch.nn.GroupNorm default eps
_MiB = 1024 * 1024
_HI = jax.lax.Precision.HIGHEST


# ---------------------------------------------------------------------------
# Hardware-aware sizing helpers
# ---------------------------------------------------------------------------
def _vmem_limit_bytes():
    """Scoped-VMEM request: ~48 MiB on v7x (64 MiB/TC), ~96 MiB on v5e/v6e."""
    try:
        cap = int(pltpu.get_tpu_info().vmem_capacity_bytes)
    except Exception:
        cap = 64 * _MiB                      # conservative, safe on every chip
    return max(32 * _MiB, min(100 * _MiB, (cap * 3) // 4))


def _choose_strip_rows(H, W, Cin, Cout, budget_bytes):
    """Largest divisor of H (keeping >=2 strips) whose strip footprint fits."""
    Cbig = max(Cin, Cout)

    def footprint(rows):
        m, mext = rows * W, (rows + 2) * W
        io = 2 * (m * Cbig * 4 + m * Cin * 4 + 2 * W * Cbig * 4 + m * Cout * 4)
        tmp = (2 * mext * Cbig * 4 + 4 * mext * 3 * Cbig
               + m * 3 * Cbig * 2 + 2 * m * Cout * 4)
        wts = 4 * (9 * Cin * Cout + 9 * Cout * Cout + Cin * Cout)
        return io + tmp + wts

    divisors = [d for d in range(H - 1, 0, -1) if H % d == 0] or [H]
    for d in divisors:
        if footprint(d) <= budget_bytes:
            return d
    return divisors[-1]


# ---------------------------------------------------------------------------
# In-kernel building block: pointwise GroupNorm -> SiLU -> 3x3 conv (K-packed)
# ---------------------------------------------------------------------------
def _gn_silu_conv(x_ext, mean_c, rstd_c, gamma, beta, wp_ref, cbias,
                  *, W, strip_rows, strip_idx, H):
    """x_ext: ((S+2)*W, Cin) f32 haloed activation -> (S*W, Cout) f32."""
    S = strip_rows
    M = S * W
    Mext = x_ext.shape[0]
    Cin = x_ext.shape[1]

    # Pointwise GroupNorm (stats precomputed per sample) + SiLU, all in f32.
    a = (x_ext - mean_c) * rstd_c * gamma + beta
    a = a * jax.nn.sigmoid(a)

    # Zero rows that fall outside the image: SAME zero padding of the conv
    # input (halo rows of the first/last strip are clamped duplicates).
    pos = jax.lax.broadcasted_iota(jnp.int32, (Mext, 1), 0)
    grow = strip_idx * S + pos // W - 1
    col = pos % W
    a = jnp.where(jnp.logical_and(grow >= 0, grow < H), a, 0.0)

    # K-pack the three dx taps: (Mext, 3*Cin) operand, masked on the input
    # side (left = source col x-1, right = source col x+1).
    zrow = jnp.zeros((1, Cin), a.dtype)
    left = jnp.where(col >= 1, jnp.concatenate([zrow, a[:-1]], axis=0), 0.0)
    right = jnp.where(col <= W - 2, jnp.concatenate([a[1:], zrow], axis=0), 0.0)
    packed = jnp.concatenate([left, a, right], axis=1).astype(jnp.bfloat16)

    # One MXU matmul per dy (K = 3*Cin); dy handled by the haloed row slices.
    acc = cbias.astype(jnp.float32)
    acc = acc + jnp.dot(packed[W:W + M], wp_ref[1],
                        preferred_element_type=jnp.float32)
    acc = acc + jnp.dot(packed[:M], wp_ref[0],
                        preferred_element_type=jnp.float32)
    acc = acc + jnp.dot(packed[2 * W:2 * W + M], wp_ref[2],
                        preferred_element_type=jnp.float32)
    return acc


# ---------------------------------------------------------------------------
# Kernels
# ---------------------------------------------------------------------------
def _gn_stats_kernel(x_ref, st_ref):
    """Per-strip per-channel sums / sums-of-squares for GroupNorm-1."""
    x = x_ref[0].astype(jnp.float32)
    st_ref[0, 0] = jnp.concatenate(
        [jnp.sum(x, axis=0, keepdims=True),
         jnp.sum(x * x, axis=0, keepdims=True)], axis=0)


def _part1_kernel(x_ref, xa_ref, xb_ref, m_ref, r_ref, g_ref, b_ref,
                  wp_ref, cb_ref, h_ref, st_ref, *, W, strip_rows, H):
    """norm1 -> SiLU -> conv1; also emits per-strip stats for norm2."""
    s = pl.program_id(1)
    x_ext = jnp.concatenate([xa_ref[0], x_ref[0], xb_ref[0]],
                            axis=0).astype(jnp.float32)
    acc = _gn_silu_conv(x_ext, m_ref[0], r_ref[0], g_ref[...], b_ref[...],
                        wp_ref, cb_ref[...],
                        W=W, strip_rows=strip_rows, strip_idx=s, H=H)
    # GroupNorm-2 partial stats from the f32 accumulator (before bf16 store).
    st_ref[0, 0] = jnp.concatenate(
        [jnp.sum(acc, axis=0, keepdims=True),
         jnp.sum(acc * acc, axis=0, keepdims=True)], axis=0)
    h_ref[0] = acc.astype(h_ref.dtype)


def _part2_kernel(*refs, W, strip_rows, H, is_middle):
    """norm2 -> SiLU -> conv2 -> (+ optional 1x1 shortcut) -> residual add."""
    if is_middle:
        (h_ref, ha_ref, hb_ref, x_ref, m_ref, r_ref, g_ref, b_ref,
         wp_ref, cb_ref, o_ref) = refs
        wsc_ref = bsc_ref = None
    else:
        (h_ref, ha_ref, hb_ref, x_ref, m_ref, r_ref, g_ref, b_ref,
         wp_ref, cb_ref, wsc_ref, bsc_ref, o_ref) = refs

    s = pl.program_id(1)
    h_ext = jnp.concatenate([ha_ref[0], h_ref[0], hb_ref[0]],
                            axis=0).astype(jnp.float32)
    acc = _gn_silu_conv(h_ext, m_ref[0], r_ref[0], g_ref[...], b_ref[...],
                        wp_ref, cb_ref[...],
                        W=W, strip_rows=strip_rows, strip_idx=s, H=H)
    if is_middle:
        sc = x_ref[0].astype(jnp.float32)
    else:
        sc = jnp.dot(x_ref[0].astype(jnp.bfloat16), wsc_ref[...],
                     preferred_element_type=jnp.float32) + bsc_ref[...]
    o_ref[0] = (sc + acc).astype(o_ref.dtype)


# ---------------------------------------------------------------------------
# JAX-side GroupNorm stats finalize (tiny: (B, n_strips, 2, C) -> (B, 1, C))
# ---------------------------------------------------------------------------
def _finalize_group_stats(partial, n_per_group):
    B = partial.shape[0]
    C = partial.shape[-1]
    cs = C // GROUPS
    tot = partial.sum(axis=1)                                    # (B, 2, C)
    g = tot.reshape(B, 2, GROUPS, cs).sum(-1)                    # (B, 2, G)
    mean = g[:, 0] / n_per_group
    var = jnp.maximum(g[:, 1] / n_per_group - mean * mean, 0.0)  # biased (torch)
    rstd = jax.lax.rsqrt(var + EPS)
    mean_c = jnp.repeat(mean, cs, axis=-1)[:, None, :]           # (B, 1, C)
    rstd_c = jnp.repeat(rstd, cs, axis=-1)[:, None, :]
    return mean_c.astype(jnp.float32), rstd_c.astype(jnp.float32)


# ---------------------------------------------------------------------------
# Wrapper
# ---------------------------------------------------------------------------
def resnet_block(x_nchw, params, is_middle, out_dtype=jnp.float32):
    """x_nchw: (B, Cin, H, W) -> (B, Cout, H, W) in out_dtype."""
    B, Cin, H, W = x_nchw.shape
    Cout = params["w1"].shape[-1]
    M = H * W
    x = jnp.transpose(x_nchw, (0, 2, 3, 1)).reshape(B, M, Cin)

    vmem_limit = _vmem_limit_bytes()
    S = _choose_strip_rows(H, W, Cin, Cout, budget_bytes=vmem_limit // 2)
    n_strips = H // S

    wp1 = params["w1"].reshape(3, 3 * Cin, Cout).astype(jnp.bfloat16)
    wp2 = params["w2"].reshape(3, 3 * Cout, Cout).astype(jnp.bfloat16)

    cparams = pltpu.CompilerParams(
        dimension_semantics=("parallel", "parallel"),
        vmem_limit_bytes=vmem_limit)

    # ---- BlockSpec helpers ---------------------------------------------------
    def strip_spec(C):
        return pl.BlockSpec((1, S * W, C), lambda b, s: (b, s, 0))

    def halo_above_spec(C):
        return pl.BlockSpec((1, W, C),
                            lambda b, s: (b, jnp.maximum(s * S - 1, 0), 0))

    def halo_below_spec(C):
        return pl.BlockSpec((1, W, C),
                            lambda b, s: (b, jnp.minimum((s + 1) * S, H - 1), 0))

    def sample_spec(C):                       # per-sample (B, 1, C) stats
        return pl.BlockSpec((1, 1, C), lambda b, s: (b, 0, 0))

    def const_spec(shape):                    # grid-invariant parameter
        nd = len(shape)
        return pl.BlockSpec(shape, lambda b, s, _n=nd: (0,) * _n)

    def stats_out_spec(C):
        return pl.BlockSpec((1, 1, 2, C), lambda b, s: (b, s, 0, 0))

    xbytes = jnp.dtype(x.dtype).itemsize
    obytes = jnp.dtype(out_dtype).itemsize

    # ---- pass 0: GroupNorm-1 statistics over x -------------------------------
    st1 = pl.pallas_call(
        _gn_stats_kernel,
        out_shape=jax.ShapeDtypeStruct((B, n_strips, 2, Cin), jnp.float32),
        grid_spec=pltpu.PrefetchScalarGridSpec(
            num_scalar_prefetch=0, grid=(B, n_strips),
            in_specs=[strip_spec(Cin)], out_specs=stats_out_spec(Cin)),
        compiler_params=cparams,
        cost_estimate=pl.CostEstimate(
            flops=2 * B * M * Cin, transcendentals=0,
            bytes_accessed=B * M * Cin * xbytes + B * n_strips * 2 * Cin * 4),
    )(x)
    mean1, rstd1 = _finalize_group_stats(st1, M * (Cin // GROUPS))

    # ---- pass 1: norm1 -> SiLU -> conv1 (+ norm2 partial stats) --------------
    kernel_a = functools.partial(_part1_kernel, W=W, strip_rows=S, H=H)
    h1, st2 = pl.pallas_call(
        kernel_a,
        out_shape=(jax.ShapeDtypeStruct((B, M, Cout), jnp.bfloat16),
                   jax.ShapeDtypeStruct((B, n_strips, 2, Cout), jnp.float32)),
        grid_spec=pltpu.PrefetchScalarGridSpec(
            num_scalar_prefetch=0, grid=(B, n_strips),
            in_specs=[strip_spec(Cin), halo_above_spec(Cin), halo_below_spec(Cin),
                      sample_spec(Cin), sample_spec(Cin),
                      const_spec((1, Cin)), const_spec((1, Cin)),
                      const_spec((3, 3 * Cin, Cout)), const_spec((1, Cout))],
            out_specs=[strip_spec(Cout), stats_out_spec(Cout)]),
        compiler_params=cparams,
        cost_estimate=pl.CostEstimate(
            flops=2 * B * M * 9 * Cin * Cout,
            transcendentals=B * (M + 2 * n_strips * W) * Cin,
            bytes_accessed=(B * (M + 2 * n_strips * W) * Cin * xbytes
                            + B * M * Cout * 2 + 2 * 9 * Cin * Cout)),
    )(x, x, x, mean1, rstd1, params["g1"], params["b1"], wp1, params["cb1"])
    mean2, rstd2 = _finalize_group_stats(st2, M * (Cout // GROUPS))

    # ---- pass 2: norm2 -> SiLU -> conv2 -> (+1x1 shortcut) -> residual -------
    inputs = [h1, h1, h1, x, mean2, rstd2,
              params["g2"], params["b2"], wp2, params["cb2"]]
    in_specs = [strip_spec(Cout), halo_above_spec(Cout), halo_below_spec(Cout),
                strip_spec(Cin), sample_spec(Cout), sample_spec(Cout),
                const_spec((1, Cout)), const_spec((1, Cout)),
                const_spec((3, 3 * Cout, Cout)), const_spec((1, Cout))]
    flops_b = 2 * B * M * 9 * Cout * Cout
    if not is_middle:
        inputs += [params["wsc"].reshape(Cin, Cout).astype(jnp.bfloat16),
                   params["bsc"]]
        in_specs += [const_spec((Cin, Cout)), const_spec((1, Cout))]
        flops_b += 2 * B * M * Cin * Cout

    kernel_b = functools.partial(_part2_kernel, W=W, strip_rows=S, H=H,
                                 is_middle=is_middle)
    y = pl.pallas_call(
        kernel_b,
        out_shape=jax.ShapeDtypeStruct((B, M, Cout), out_dtype),
        grid_spec=pltpu.PrefetchScalarGridSpec(
            num_scalar_prefetch=0, grid=(B, n_strips),
            in_specs=in_specs, out_specs=strip_spec(Cout)),
        compiler_params=cparams,
        cost_estimate=pl.CostEstimate(
            flops=flops_b,
            transcendentals=B * (M + 2 * n_strips * W) * Cout,
            bytes_accessed=(B * (M + 2 * n_strips * W) * Cout * 2
                            + B * M * Cin * xbytes + B * M * Cout * obytes
                            + 2 * (9 * Cout * Cout + Cin * Cout))),
    )(*inputs)
    return jnp.transpose(y.reshape(B, H, W, Cout), (0, 3, 1, 2))


# ---------------------------------------------------------------------------
# Synthetic parameters + plain-JAX reference (torch ResnetBlock semantics)
# ---------------------------------------------------------------------------
def init_params(key, log2_in, log2_out):
    m, n = 2 ** log2_in, 2 ** log2_out
    ks = jax.random.split(key, 10)
    p = dict(
        g1=1.0 + 0.1 * jax.random.normal(ks[0], (1, m), jnp.float32),
        b1=0.1 * jax.random.normal(ks[1], (1, m), jnp.float32),
        w1=0.1 * jax.random.normal(ks[2], (3, 3, m, n), jnp.float32),   # HWIO
        cb1=0.1 * jax.random.normal(ks[3], (1, n), jnp.float32),
        g2=1.0 + 0.1 * jax.random.normal(ks[4], (1, n), jnp.float32),
        b2=0.1 * jax.random.normal(ks[5], (1, n), jnp.float32),
        w2=0.1 * jax.random.normal(ks[6], (3, 3, n, n), jnp.float32),
        cb2=0.1 * jax.random.normal(ks[7], (1, n), jnp.float32),
    )
    is_middle = (m == n)
    if not is_middle:
        p["wsc"] = 0.1 * jax.random.normal(ks[8], (1, 1, m, n), jnp.float32)
        p["bsc"] = 0.1 * jax.random.normal(ks[9], (1, n), jnp.float32)
    return p, is_middle


def reference(x_nchw, p, is_middle):
    x = jnp.transpose(x_nchw, (0, 2, 3, 1))

    def gn(h, gamma, beta):
        B, H, W, C = h.shape
        hg = h.reshape(B, H * W, GROUPS, C // GROUPS)
        mean = hg.mean(axis=(1, 3), keepdims=True)
        var = ((hg - mean) ** 2).mean(axis=(1, 3), keepdims=True)
        hn = ((hg - mean) / jnp.sqrt(var + EPS)).reshape(B, H, W, C)
        return hn * gamma.reshape(1, 1, 1, C) + beta.reshape(1, 1, 1, C)

    def conv(h, w, b):
        y = jax.lax.conv_general_dilated(
            h, w, (1, 1), "SAME",
            dimension_numbers=("NHWC", "HWIO", "NHWC"), precision=_HI)
        return y + b.reshape(1, 1, 1, -1)

    h = gn(x, p["g1"], p["b1"])
    h = h * jax.nn.sigmoid(h)
    h = conv(h, p["w1"], p["cb1"])
    h = gn(h, p["g2"], p["b2"])
    h = h * jax.nn.sigmoid(h)
    h = conv(h, p["w2"], p["cb2"])
    if not is_middle:
        x = conv(x, p["wsc"], p["bsc"])
    return jnp.transpose(x + h, (0, 3, 1, 2))


if __name__ == "__main__":
    key = jax.random.PRNGKey(0)
    kx1, kx2, kp1, kp2 = jax.random.split(key, 4)
    B, H, W = 2, 16, 16          # 16x16 = native VQGAN latent grid
    # Tolerance sized for bf16 MXU operands / bf16 intermediate activations
    # with f32 accumulation vs. an f32/HIGHEST reference.
    ATOL, RTOL = 7.5e-2, 5e-2

    # Case 1: Cin != Cout (nin_shortcut path), f32 output.
    p1, is_mid1 = init_params(kp1, 6, 7)
    x1 = jax.random.normal(kx1, (B, 64, H, W), jnp.float32)
    out1 = jax.block_until_ready(resnet_block(x1, p1, is_mid1,
                                              out_dtype=jnp.float32))
    ref1 = reference(x1, p1, is_mid1)
    assert out1.shape == (B, 128, H, W)
    assert jnp.allclose(out1, ref1, atol=ATOL, rtol=RTOL), "mismatch (shortcut)"

    # Case 2: Cin == Cout (is_middle, identity shortcut), bf16 output
    # (chained-decoder activation dtype).
    p2, is_mid2 = init_params(kp2, 6, 6)
    x2 = jax.random.normal(kx2, (B, 64, H, W), jnp.float32)
    out2 = jax.block_until_ready(resnet_block(x2, p2, is_mid2,
                                              out_dtype=jnp.bfloat16))
    ref2 = reference(x2, p2, is_mid2)
    assert out2.shape == (B, 64, H, W)
    assert jnp.allclose(out2.astype(jnp.float32), ref2,
                        atol=ATOL, rtol=RTOL), "mismatch (middle)"

    print("KERNEL_OK")
</pallas_src>

<mosaic_0001>
module attributes {stable_mosaic.version = 11 : i64} {
  func.func @_gn_stats_kernel(%arg0: i32, %arg1: i32, %arg2: memref<1x128x64xf32, #tpu.memory_space<vmem>>, %arg3: memref<1x1x2x64xf32, #tpu.memory_space<vmem>>) attributes {dimension_semantics = [#tpu.dimension_semantics<parallel>, #tpu.dimension_semantics<parallel>], iteration_bounds = array<i64: 2, 2>, scalar_prefetch = 0 : i64, scratch_operands = 0 : i64, tpu.core_type = #tpu.core_type<tc>, window_params = [{transform_indices = @transform_0, window_bounds = array<i64: 1, 128, 64>}, {transform_indices = @transform_1, window_bounds = array<i64: 1, 1, 2, 64>}]} {
    %c0 = arith.constant 0 : index
    %c0_0 = arith.constant 0 : index
    %c0_1 = arith.constant 0 : index
    %0 = vector.load %arg2[%c0, %c0_0, %c0_1] : memref<1x128x64xf32, #tpu.memory_space<vmem>>, vector<1x128x64xf32>
    %1 = vector.shape_cast %0 : vector<1x128x64xf32> to vector<128x64xf32>
    %cst = arith.constant dense<0.000000e+00> : vector<64xf32>
    %2 = vector.multi_reduction <add>, %1, %cst [0] : vector<128x64xf32> to vector<64xf32>
    %3 = vector.shape_cast %2 : vector<64xf32> to vector<1x64xf32>
    %4 = arith.mulf %1, %1 : vector<128x64xf32>
    %cst_2 = arith.constant dense<0.000000e+00> : vector<64xf32>
    %5 = vector.multi_reduction <add>, %4, %cst_2 [0] : vector<128x64xf32> to vector<64xf32>
    %6 = vector.shape_cast %5 : vector<64xf32> to vector<1x64xf32>
    %7 = tpu.concatenate %3, %6 in 0 : vector<1x64xf32>, vector<1x64xf32> -> vector<2x64xf32>
    %c0_3 = arith.constant 0 : index
    %c0_4 = arith.constant 0 : index
    %c0_5 = arith.constant 0 : index
    %c0_6 = arith.constant 0 : index
    %8 = vector.load %arg3[%c0_3, %c0_4, %c0_5, %c0_6] : memref<1x1x2x64xf32, #tpu.memory_space<vmem>>, vector<1x1x2x64xf32>
    %9 = vector.shape_cast %8 : vector<1x1x2x64xf32> to vector<2x64xf32>
    %10 = vector.shape_cast %7 : vector<2x64xf32> to vector<1x1x2x64xf32>
    tpu.vector_store %arg3[%c0_3, %c0_4, %c0_5, %c0_6], %10 {strides = array<i32>} : memref<1x1x2x64xf32, #tpu.memory_space<vmem>>, vector<1x1x2x64xf32>,
    return
  }
  func.func @transform_0(%arg0: i32, %arg1: i32) -> (i32, i32, i32) {
    %c0_i32 = arith.constant 0 : i32
    %c0_i32_0 = arith.constant 0 : i32
    return %arg0, %arg1, %c0_i32 : i32, i32, i32
  }
  func.func @transform_1(%arg0: i32, %arg1: i32) -> (i32, i32, i32, i32) {
    %c0_i32 = arith.constant 0 : i32
    %c0_i32_0 = arith.constant 0 : i32
    %c0_i32_1 = arith.constant 0 : i32
    return %arg0, %arg1, %c0_i32, %c0_i32_0 : i32, i32, i32, i32
  }
}

</mosaic_0001>

<bundles_post_ra>
// kernel: tpu_custom_call.1
= control target key start
LH: loop header
LB: loop body
LE: loop exit
PB: predicated region body
PF: predicated region fallthrough
CT: control target
= control target key end

     0   :  { %6 = vsyncpa [#allocation3], 0  ;;  %s728_s0 = inlined_call_operand.vmem [shape: f32[2,256,64], index: 0, kind: input, shape index: {}]   ;;  %s729_s1 = inlined_call_operand.hbm [shape: f32[2,2,2,64], index: 1, kind: output, shape index: {}]  }
   0x1   :  { %8 = vsyncpa [#allocation3 + $0x1], 0  ;;  %s542_s6 = smov 0   ;;  %s544_s7 = smov 0  }
   0x2   :  { %s546_s8 = smov 0   ;;  %s548_s9 = smov 0  }
   0x3   :  { %s550_s10 = smov 0   ;;  %s552_s11 = smov 0  }
   0x4   :  { %s554_s12 = smov 0   ;;  %s556_s13 = smov 0  }
   0x5 LB: > { %s350_s14 = sadd.s32 4294967295, %s529_s13   ;;  %s351_s15 = sadd.s32 4294967294, %s529_s13   ;;  %s529_s13 = sphi %s556_s13, %s14_s13   ;;  %s525_s12 = sphi %s554_s12, %s738_s12   ;;  %s521_s11 = sphi %s552_s11, %s737_s11   ;;  %s517_s10 = sphi %s550_s10, %s736_s10   ;;  %s513_s9 = sphi %s548_s9, %s735_s9   ;;  %s509_s8 = sphi %s546_s8, %s734_s8   ;;  %s505_s7 = sphi %s544_s7, %s733_s7   ;;  %s501_s6 = sphi %s542_s6, %s732_s6  }
   0x6   : > { %s23_s16 = sadd.s32 1, %s521_s11  ;;  %s26_s17 = sadd.s32 1, %s525_s12 }
   0x7   : > { %p24_p0 = scmp.ge.s32.totalorder %s23_s16, 2  ;;  %p73_p1 = scmp.ne.s32.totalorder %s509_s8, %s505_s7 }
   0x8   : > { %p74_p2 = scmp.eq.s32.totalorder %s350_s14, 3  ;;  %p79_p5 = scmp.ne.s32.totalorder %s505_s7, %s501_s6 }
   0x9   : > { %s740_s16 = smov (%p24_p0, %s23_s16), 0  ;;  %s742_s17 = smov (!%p24_p0, %s26_s17), %s525_s12 }
   0xa   : > { %s59_s18 = ssub.s32 %s521_s11, %s740_s16  ;;  %p593_p3 = por %p74_p2, %p73_p1 }
   0xb   : > { %p28_p4 = scmp.ge.s32.totalorder %s742_s17, 2  ;;  %p80_p6 = scmp.eq.s32.totalorder %s351_s15, 3 }
   0xc   : > { %p354_p7 = scmp.ge.s32.totalorder %s529_s13, 1  ;;  %p111_p9 = scmp.lt.s32.totalorder %s529_s13, 5 }
   0xd   : > { %s744_s17 = smov (%p28_p4, %s742_s17), 0  ;;  %p602_p8 = por %p80_p6, %p79_p5 }
   0xe   : > { %s58_s21 = ssub.s32 %s525_s12, %s744_s17  ;;  %s63_s22 = sadd.s32 1, %s509_s8 }
   0xf   : > { %s60_s23 = sor.u32 %s59_s18, %s58_s21  ;;  %p112_p10 = pnand %p354_p7, %p111_p9 }
  0x10   : > { %p61_p11 = scmp.eq.s32.totalorder %s60_s23, 0  ;;  %s356_s25 = sshll.u32 (!%p112_p10), %s513_s9, 4  ;;  %vm161_vm0 = vcmask (!%p112_p10), 523264   ;;  %vm252_vm1 = vcmask (!%p112_p10), 1040384   ;;  %vm254_vm2 = vcmask (!%p112_p10), 517120  }
  0x11   : > { %115 = sbr.rel (%p112_p10) target bundleno = 92 (0x5c), region = 24  ;;  %p136_p12 = scmp.lt.s32.totalorder (!%p112_p10), %s517_s10, 1 }
  0x12   : > { %s611_s24 = scalar_select %p61_p11, %s509_s8, %s63_s22  }
  0x13   : > { %p138_p13 = scmp.lt.s32.totalorder (!%p112_p10), %s356_s25, 31  ;;  %s132_s4 = sand.u32 (!%p112_p10), 1, %s505_s7  }
  0x14   : > { %s355_s5 = sshll.u32 (!%p112_p10), %s132_s4, 1  ;;  %s360_s14 = sshll.u32 (!%p112_p10), %s517_s10, 1 }
  0x15   : > { %s268_s15 = sadd.s32 (!%p112_p10), %s513_s9, %s360_s14  ;;  %s134_s21 = scalar_lea.vmem (!%p112_p10), [#allocation2], %s355_s5 }
  0x16   : > { %s361_s18 = sshll.u32 (!%p112_p10), %s268_s15, 5  ;;  %s272_s22 = sshll.u32 (!%p112_p10), %s134_s21, 4  ;;  %s677_s22 = int_to_ptr.vmem [resolvable:$true] %s272_s22 }
  0x17   : > { %s257_s9 = scalar_lea.sflag (!%p112_p10), [#allocation3], %s132_s4 }
  0x18   : > { %s137_s26 = scalar_select %p136_p12, %s517_s10, 1 }
  0x19   : > { %s746_s25 = smov (!%p138_p13, %s356_s25), 31  ;;  %s435_s10 = scalar_lea.vmem %s677_s22, 32 }
  0x1a   : > { %s357_s27 = sshll.u32 %s137_s26, 5  ;;  %s675_s26 = scalar_lea.hbm %s729_s1, %s361_s18 }
  0x1b   : > { %s141_s28 = sadd.s32 %s357_s27, %s746_s25  ;;  %p436_p0 = scmp.ne.s32.totalorder %s677_s22, %s435_s10 }
  0x1c   : > { %s358_s29 = sshll.u32 %s141_s28, 3  ;;  %s531_s27 = smov [#allocation2]  }
  0x1d   : > { %s619_s3 = scalar_lea.vmem %s728_s0, %s358_s29  ;;  %p437_p1 = pnand %p436_p0, %p593_p3 }
  0x1e   : > { %v145_v0 = vld [vmem:[%s619_s3] sm:$0xff]  ;;  %v146_v1 = vld [vmem:[%s619_s3 + $0x8] sm:$0xff]  ;;  %v147_v2 = vld [vmem:[%s619_s3 + $0x10] sm:$0xff]  ;;  %s439_s28 = sshll.u32 %s531_s27, 4  ;;  %s440_s28 = int_to_ptr.vmem [resolvable:$false] %s439_s28 }
  0x1f   : > { %v162_v3 = vsel %vm161_vm0, %v145_v0, 0.0  ;;  %v163_v4 = vsel %vm161_vm0, %v146_v1, 0.0  ;;  %v165_v5 = vsel %vm161_vm0, %v147_v2, 0.0  ;;  %v148_v6 = vld [vmem:[%s619_s3 + $0x18] sm:$0xff]  ;;  %v149_v9 = vld [vmem:[%s619_s3 + $0x20] sm:$0xff]  ;;  %v150_v12 = vld [vmem:[%s619_s3 + $0x28] sm:$0xff]  ;;  %v199_v14 = vmul.f32 %v145_v0, %v145_v0  ;;  %p438_p2 = pneg %p437_p1  ;;  %p442_p4 = scmp.lt.s32.totalorder %s677_s22, %s440_s28 }
  0x20   : > { %v164_v7 = vadd.f32 %v163_v4, %v162_v3  ;;  %v167_v8 = vsel %vm161_vm0, %v148_v6, 0.0  ;;  %v169_v11 = vsel %vm161_vm0, %v149_v9, 0.0  ;;  %v200_v15 = vmul.f32 %v146_v1, %v146_v1  ;;  %v151_v18 = vld [vmem:[%s619_s3 + $0x30] sm:$0xff]  ;;  %v152_v23 = vld [vmem:[%s619_s3 + $0x38] sm:$0xff]  ;;  %v153_v30 = vld [vmem:[%s619_s3 + $0x40] sm:$0xff]  ;;  %s441_s29 = scalar_lea.vmem %s440_s28, 64 }
  0x21   : > { %v201_v16 = vmul.f32 %v147_v2, %v147_v2  ;;  %v171_v17 = vsel %vm161_vm0, %v150_v12, 0.0  ;;  %v202_v20 = vmul.f32 %v148_v6, %v148_v6  ;;  %v173_v21 = vsel %vm161_vm0, %v151_v18, 0.0  ;;  %v154_v36 = vld [vmem:[%s619_s3 + $0x48] sm:$0xff]  ;;  %v155_v42 = vld [vmem:[%s619_s3 + $0x50] sm:$0xff]  ;;  %v156_v48 = vld [vmem:[%s619_s3 + $0x58] sm:$0xff]  ;;  %p443_p5 = scmp.lt.s32.totalorder %s441_s29, %s435_s10 }
  0x22   : > { %v166_v10 = vadd.f32 %v165_v5, %v164_v7  ;;  %v203_v22 = vmul.f32 %v149_v9, %v149_v9  ;;  %v215_v25 = vsel %vm161_vm0, %v199_v14, 0.0  ;;  %v216_v26 = vsel %vm161_vm0, %v200_v15, 0.0  ;;  %v157_v54 = vld [vmem:[%s619_s3 + $0x60] sm:$0xff]  ;;  %v158_v60 = vld [vmem:[%s619_s3 + $0x68] sm:$0xff]  ;;  %v159_v2 = vld [vmem:[%s619_s3 + $0x70] sm:$0xff] }
  0x23   : > { %v218_v27 = vsel %vm161_vm0, %v201_v16, 0.0  ;;  %v175_v28 = vsel %vm161_vm0, %v152_v23, 0.0  ;;  %v217_v29 = vadd.f32 %v216_v26, %v215_v25  ;;  %v204_v32 = vmul.f32 %v150_v12, %v150_v12  ;;  %p444_p6 = por %p443_p5, %p442_p4 }
  0x24   : > { %v168_v13 = vadd.f32 %v167_v8, %v166_v10  ;;  %v220_v33 = vsel %vm161_vm0, %v202_v20, 0.0  ;;  %v177_v34 = vsel %vm161_vm0, %v153_v30, 0.0  ;;  %v205_v38 = vmul.f32 %v151_v18, %v151_v18  ;;  %v160_v8 = vld [vmem:[%s619_s3 + $0x78] sm:$0xff] }
  0x25   : > { %v219_v35 = vadd.f32 %v218_v27, %v217_v29  ;;  %v222_v39 = vsel %vm161_vm0, %v203_v22, 0.0  ;;  %v179_v40 = vsel %vm161_vm0, %v154_v36, 0.0  ;;  %v206_v44 = vmul.f32 %v152_v23, %v152_v23  ;;  %p445_p7 = pnand %p444_p6, %p438_p2 }
  0x26   : > { %v170_v19 = vadd.f32 %v169_v11, %v168_v13  ;;  %v224_v45 = vsel %vm161_vm0, %v204_v32, 0.0  ;;  %v181_v46 = vsel %vm161_vm0, %v155_v42, 0.0  ;;  %v207_v50 = vmul.f32 %v153_v30, %v153_v30 }
  0x27   : > { %v221_v41 = vadd.f32 %v220_v33, %v219_v35  ;;  %v226_v51 = vsel %vm161_vm0, %v205_v38, 0.0  ;;  %v183_v52 = vsel %vm161_vm0, %v156_v48, 0.0  ;;  %v208_v56 = vmul.f32 %v154_v36, %v154_v36 }
  0x28   : > { %v172_v24 = vadd.f32 %v171_v17, %v170_v19  ;;  %v228_v57 = vsel %vm161_vm0, %v206_v44, 0.0  ;;  %v185_v58 = vsel %vm161_vm0, %v157_v54, 0.0  ;;  %v209_v62 = vmul.f32 %v155_v42, %v155_v42 }
  0x29   : > { %v223_v47 = vadd.f32 %v222_v39, %v221_v41  ;;  %v230_v63 = vsel %vm161_vm0, %v207_v50, 0.0  ;;  %v187_v0 = vsel %vm161_vm0, %v158_v60, 0.0  ;;  %v210_v4 = vmul.f32 %v156_v48, %v156_v48 }
  0x2a   : > { %v174_v31 = vadd.f32 %v173_v21, %v172_v24  ;;  %v232_v5 = vsel %vm161_vm0, %v208_v56, 0.0  ;;  %v189_v6 = vsel %vm161_vm0, %v159_v2, 0.0  ;;  %v211_v10 = vmul.f32 %v157_v54, %v157_v54 }
  0x2b   : > { %v225_v53 = vadd.f32 %v224_v45, %v223_v47  ;;  %v234_v11 = vsel %vm161_vm0, %v209_v62, 0.0  ;;  %v191_v12 = vsel %vm161_vm0, %v160_v8, 0.0  ;;  %v212_v15 = vmul.f32 %v158_v60, %v158_v60 }
  0x2c   : > { %v176_v37 = vadd.f32 %v175_v28, %v174_v31  ;;  %v236_v16 = vsel %vm161_vm0, %v210_v4, 0.0  ;;  %v213_v19 = vmul.f32 %v159_v2, %v159_v2  ;;  %v238_v20 = vsel %vm161_vm0, %v211_v10, 0.0 }
  0x2d   : > { %v227_v59 = vadd.f32 %v226_v51, %v225_v53  ;;  %v214_v23 = vmul.f32 %v160_v8, %v160_v8  ;;  %v240_v24 = vsel %vm161_vm0, %v212_v15, 0.0 }
  0x2e   : > { %v178_v43 = vadd.f32 %v177_v34, %v176_v37  ;;  %v242_v27 = vsel %vm161_vm0, %v213_v19, 0.0 }
  0x2f   : > { %v229_v1 = vadd.f32 %v228_v57, %v227_v59  ;;  %v244_v29 = vsel %vm161_vm0, %v214_v23, 0.0 }
  0x30   : > { %v180_v49 = vadd.f32 %v179_v40, %v178_v43 }
  0x31   : > { %v231_v7 = vadd.f32 %v230_v63, %v229_v1 }
  0x32   : > { %v182_v55 = vadd.f32 %v181_v46, %v180_v49 }
  0x33   : > { %v233_v13 = vadd.f32 %v232_v5, %v231_v7 }
  0x34   : > { %v184_v61 = vadd.f32 %v183_v52, %v182_v55 }
  0x35   : > { %v235_v17 = vadd.f32 %v234_v11, %v233_v13 }
  0x36   : > { %v186_v3 = vadd.f32 %v185_v58, %v184_v61 }
  0x37   : > { %v237_v21 = vadd.f32 %v236_v16, %v235_v17 }
  0x38   : > { %v188_v9 = vadd.f32 %v187_v0, %v186_v3 }
  0x39   : > { %v239_v25 = vadd.f32 %v238_v20, %v237_v21 }
  0x3a   : > { %v190_v14 = vadd.f32 %v189_v6, %v188_v9 }
  0x3b   : > { %v241_v28 = vadd.f32 %v240_v24, %v239_v25 }
  0x3c   : > { %v192_v18 = vadd.f32 %v191_v12, %v190_v14 }
  0x3d   : > { %v243_v31 = vadd.f32 %v242_v27, %v241_v28 }
  0x3e   : > { %v193_v22 = vrot.slane %v192_v18, 4 }
  0x3f   : > { %v245_v32 = vadd.f32 %v244_v29, %v243_v31 }
  0x40   : > { %v194_v26 = vadd.f32 %v193_v22, %v192_v18 }
  0x41   : > { %v246_v34 = vrot.slane %v245_v32, 4 }
  0x42   : > { %v195_v30 = vrot.slane %v194_v26, 2 }
  0x43   : > { %v247_v35 = vadd.f32 %v246_v34, %v245_v32 }
  0x44   : > { %v196_v33 = vadd.f32 %v195_v30, %v194_v26 }
  0x45   : > { %v248_v37 = vrot.slane %v247_v35, 2 }
  0x46   : > { %v197_v36 = vrot.slane %v196_v33, 1 }
  0x47   : > { %v249_v38 = vadd.f32 %v248_v37, %v247_v35 }
  0x48   : > { %v198_v39 = vadd.f32 %v197_v36, %v196_v33 }
  0x49   : > { %v250_v40 = vrot.slane %v249_v38, 1 }
  0x4b   : > { %v251_v41 = vadd.f32 %v250_v40, %v249_v38 }
  0x4d   : > { %v253_v42 = vsel %vm252_vm1, %v198_v39, %v251_v41 }
  0x4e   : > { %255 = vst.msk [vmem:[%s134_s21] sm:$0x3] %vm254_vm2, %v253_v42 }
  0x4f   : > { %448 = shalt.err (!%p445_p7)
}
  0x50   : > { %s449_s30 = scalar_lea.hbm %s675_s26, 32  ;;  %s453_s4 = scalar_lea.hbm %s729_s1, 128 }
  0x51   : > { %p450_p9 = scmp.ne.s32.totalorder %s675_s26, %s449_s30  ;;  %p454_p12 = scmp.lt.u32.totalorder %s675_s26, %s729_s1 }
  0x52   : > { %p455_p13 = scmp.lt.u32.totalorder %s453_s4, %s449_s30  ;;  %p457_p1 = scmp.lt.u32.totalorder %s449_s30, %s675_s26 }
  0x53   : > { %p451_p10 = pnand %p450_p9, %p593_p3 }
  0x54   : > { %p456_p0 = por %p455_p13, %p454_p12 }
  0x55   : > { %p452_p11 = pneg %p451_p10 }
  0x56   : > { %p458_p2 = por %p457_p1, %p456_p0 }
  0x58   : > { %p459_p4 = pnand %p458_p2, %p452_p11 }
  0x5a   : > { %462 = shalt.err (!%p459_p4)
}
  0x5b   : > { %364 = dma.vmem_to_hbm [thread:$0]  (%p593_p3), %s677_s22, 32, %s675_s26, %s257_s9  }
  0x5c PF: > { %p370_p5 = scmp.ge.s32.totalorder %s529_s13, 2  ;;  %s284_s15 = sand.u32 1, %s501_s6  }
  0x5d   : > { %s285_s18 = scalar_lea.sflag [#allocation3], %s284_s15 }
  0x5e   : > { %p367_p6 = pnand %p370_p5, %p602_p8 }
  0x60   : > { %496 = dma.done.wait (!%p367_p6), %s285_s18, 32  }
  0x61   : > { %498 = vsyncadd (!%p367_p6), %s285_s18, 4294967264  ;;  %s14_s13 = sadd.s32 1, %s529_s13   ;;  %s732_s6 = smov %s505_s7 }
  0x62   : > { %p11_p7 = scmp.ge.s32.totalorder %s14_s13, 6   ;;  %s733_s7 = smov %s509_s8 }
  0x63   : > { %s734_s8 = smov %s611_s24  ;;  %s735_s9 = smov %s521_s11 }
  0x64   : > { %s736_s10 = smov %s525_s12  ;;  %s737_s11 = smov %s740_s16 }
  0x65   : > { %s738_s12 = smov %s744_s17  ;;  %13 = sbr.rel (!%p11_p7) target bundleno = 5 (0x5), region = 59 }
  0x6c   :  { %290 = vsyncpa [#allocation3], 1 }
  0x6d   :  { %292 = vsyncpa [#allocation3 + $0x1], 1 }

</bundles_post_ra>
